<compile_context>
chip_gen: v5e
topology: v5e:2x2
jax: 0.10.0
libtpu: 0.0.40
codegen_flags: <defaults>
</compile_context>

<pallas_src>
import functools

import jax
import jax.numpy as jnp
from jax.experimental import pallas as pl
from jax.experimental.pallas import tpu as pltpu

EPS = 1e-5


# --------------------------------------------------------------------------
# Hardware-aware budgets
# --------------------------------------------------------------------------
def _vmem_capacity_bytes():
    try:
        info = pltpu.get_tpu_info()
        for attr in ("vmem_capacity_bytes", "vmem_size_bytes", "vmem_bytes"):
            v = getattr(info, attr, None)
            if v:
                return int(v)
    except Exception:
        pass
    return 64 * 1024 * 1024  # conservative (v7x-class) default


def _hw_budgets():
    cap = _vmem_capacity_bytes()
    if cap <= 64 * 1024 * 1024:
        # v7x-class: 64 MiB physical VMEM -> conservative tiles & limit.
        return {"tile_budget": 4 << 20, "vmem_limit": 32 << 20,
                "fused_budget": 4 << 20}
    # v5e / v6e: 128 MiB physical -> bigger tiles cut per-step overhead.
    return {"tile_budget": 8 << 20, "vmem_limit": 96 << 20,
            "fused_budget": 12 << 20}


def _pick_tiles(N, C, HW, tile_budget):
    """Pick (TN, THW) so one f32 working tile fits the budget.

    Prefers exact divisors (stats accumulation stays free of padded garbage);
    falls back to padded+masked lane tiling for pathological H*W. Guarantees
    >= 2 grid points along the 'parallel' batch axis when N > 1 so both
    TensorCores on v7x get work."""
    elem = 4  # f32 working copy even for bf16 inputs
    slab = C * HW * elem  # one sample, full spatial extent
    if slab <= tile_budget:
        tn = max(1, min(N, tile_budget // slab))
        while N % tn:
            tn -= 1
        if tn == N and N > 1:        # keep at least 2 parallel grid points
            tn = max(1, N // 2)
            while N % tn:
                tn -= 1
        return tn, HW
    # A single sample does not fit: tile the spatial (lane) axis with a
    # multiple of 128 that divides H*W exactly.
    best = 0
    for d in range(128, HW + 1, 128):
        if HW % d == 0 and C * d * elem <= tile_budget:
            best = d
    if best:
        return 1, best
    # No friendly divisor: padded + masked tiling (stats kernel zeroes the
    # out-of-range lanes; boundary output blocks are clipped on store).
    thw = max(128, (tile_budget // (C * elem)) // 128 * 128)
    if thw >= HW:
        return 1, HW
    return 1, thw


# --------------------------------------------------------------------------
# Kernels
# --------------------------------------------------------------------------
def _fused_kernel(x_ref, w_ref, b_ref, o_ref, *, count):
    """Single-pass BN: stats + normalize in one VMEM-resident block."""
    x = x_ref[...].astype(jnp.float32)                          # (N, C, HW)
    s = jnp.sum(jnp.sum(x, axis=-1, keepdims=True), axis=0)     # (C, 1)
    sq = jnp.sum(jnp.sum(x * x, axis=-1, keepdims=True), axis=0)
    inv_count = jnp.float32(1.0 / count)
    mean = s * inv_count
    var = jnp.maximum(sq * inv_count - mean * mean, 0.0)        # clamp: no NaNs
    inv_std = jax.lax.rsqrt(var + jnp.float32(EPS))
    scale = w_ref[...].astype(jnp.float32) * inv_std            # (C, 1)
    shift = b_ref[...].astype(jnp.float32) - mean * scale
    o_ref[...] = (x * scale + shift).astype(o_ref.dtype)


def _stats_kernel(x_ref, psum_ref, psq_ref, *, thw, hw, needs_mask):
    """Phase 1: per-ni partial (sum, sumsq), accumulated over the hi axis."""
    hi = pl.program_id(1)

    @pl.when(hi == 0)
    def _():
        psum_ref[...] = jnp.zeros_like(psum_ref)
        psq_ref[...] = jnp.zeros_like(psq_ref)

    x = x_ref[...].astype(jnp.float32)                          # (TN, C, THW)
    if needs_mask:  # padded lane tiling: zero out-of-range lanes
        lane = jax.lax.broadcasted_iota(jnp.int32, x.shape, 2)
        x = jnp.where(hi * thw + lane < hw, x, 0.0)

    psum_ref[...] += jnp.sum(jnp.sum(x, axis=-1, keepdims=True),
                             axis=0, keepdims=True)             # (1, C, 1)
    psq_ref[...] += jnp.sum(jnp.sum(x * x, axis=-1, keepdims=True),
                            axis=0, keepdims=True)


def _norm_kernel(scale_ref, shift_ref, x_ref, o_ref):
    """Phase 2: y = x * scale + shift (single FMA per element)."""
    x = x_ref[...].astype(jnp.float32)                          # (TN, C, THW)
    o_ref[...] = (x * scale_ref[...] + shift_ref[...]).astype(o_ref.dtype)


# --------------------------------------------------------------------------
# Wrapper
# --------------------------------------------------------------------------
def batchnorm2d_pallas(x_nchw, weight, bias, *, force_two_pass=False,
                       tile_budget_override=None):
    """Training-mode BatchNorm2d forward. x_nchw: (N, C, H, W)."""
    N, C, H, W = x_nchw.shape
    HW = H * W
    count = N * HW
    budgets = _hw_budgets()
    vmem_limit = budgets["vmem_limit"]
    in_bytes = jnp.dtype(x_nchw.dtype).itemsize

    x3 = x_nchw.reshape(N, C, HW)          # contiguous view: no extra HBM pass
    w2 = weight.reshape(C, 1)
    b2 = bias.reshape(C, 1)

    f32_bytes = N * C * HW * 4

    # ---- Fused single-pass path (2 HBM passes) -----------------------------
    if (not force_two_pass) and f32_bytes <= budgets["fused_budget"]:
        vmem_spec = pl.BlockSpec(memory_space=pltpu.MemorySpace.VMEM)
        out3 = pl.pallas_call(
            functools.partial(_fused_kernel, count=count),
            out_shape=jax.ShapeDtypeStruct((N, C, HW), x_nchw.dtype),
            in_specs=[vmem_spec, vmem_spec, vmem_spec],
            out_specs=pl.BlockSpec(memory_space=pltpu.MemorySpace.VMEM),
            compiler_params=pltpu.CompilerParams(vmem_limit_bytes=vmem_limit),
            cost_estimate=pl.CostEstimate(
                flops=int(5 * N * C * HW),
                transcendentals=int(C),
                bytes_accessed=int(2 * N * C * HW * in_bytes)),
        )(x3, w2, b2)
        return out3.reshape(N, C, H, W)

    # ---- Streamed two-pass path (3 HBM passes) ------------------------------
    tile_budget = tile_budget_override or budgets["tile_budget"]
    tn, thw = _pick_tiles(N, C, HW, tile_budget)
    gn = -(-N // tn)
    gh = -(-HW // thw)
    needs_mask = (HW % thw) != 0

    # Phase 1: per-ni partial statistics ('parallel' ni axis -> v7x megacore).
    psum, psq = pl.pallas_call(
        functools.partial(_stats_kernel, thw=thw, hw=HW, needs_mask=needs_mask),
        out_shape=(jax.ShapeDtypeStruct((gn, C, 1), jnp.float32),
                   jax.ShapeDtypeStruct((gn, C, 1), jnp.float32)),
        grid=(gn, gh),
        in_specs=[pl.BlockSpec((tn, C, thw), lambda ni, hi: (ni, 0, hi))],
        out_specs=(pl.BlockSpec((1, C, 1), lambda ni, hi: (ni, 0, 0)),
                   pl.BlockSpec((1, C, 1), lambda ni, hi: (ni, 0, 0))),
        compiler_params=pltpu.CompilerParams(
            dimension_semantics=("parallel", "arbitrary"),
            vmem_limit_bytes=vmem_limit),
        cost_estimate=pl.CostEstimate(
            flops=int(3 * N * C * HW),
            transcendentals=0,
            bytes_accessed=int(N * C * HW * in_bytes + 8 * gn * C)),
    )(x3)

    # Tiny combine + finalize in plain XLA (cheap; keeps phase 1 parallel).
    s = jnp.sum(psum, axis=0)                                   # (C, 1)
    sq = jnp.sum(psq, axis=0)
    mean = s / count
    var = jnp.maximum(sq / count - mean * mean, 0.0)            # biased (PyTorch)
    inv_std = jax.lax.rsqrt(var + EPS)
    scale = w2.astype(jnp.float32) * inv_std
    shift = b2.astype(jnp.float32) - mean * scale

    # Phase 2: streamed, lane-dense normalize (fully parallel grid).
    out3 = pl.pallas_call(
        _norm_kernel,
        out_shape=jax.ShapeDtypeStruct((N, C, HW), x_nchw.dtype),
        grid=(gn, gh),
        in_specs=[
            pl.BlockSpec((C, 1), lambda ni, hi: (0, 0)),
            pl.BlockSpec((C, 1), lambda ni, hi: (0, 0)),
            pl.BlockSpec((tn, C, thw), lambda ni, hi: (ni, 0, hi)),
        ],
        out_specs=pl.BlockSpec((tn, C, thw), lambda ni, hi: (ni, 0, hi)),
        compiler_params=pltpu.CompilerParams(
            dimension_semantics=("parallel", "parallel"),
            vmem_limit_bytes=vmem_limit),
        cost_estimate=pl.CostEstimate(
            flops=int(2 * N * C * HW),
            transcendentals=0,
            bytes_accessed=int(2 * N * C * HW * in_bytes)),
    )(scale, shift, x3)

    return out3.reshape(N, C, H, W)


# --------------------------------------------------------------------------
# Module mirror
# --------------------------------------------------------------------------
class MultiBatchNorm2dPallas:
    """Mirror of the PyTorch MultiBatchNorm2d: several BN 'layers' sharing one
    (weight, bias); forward dispatches on `current_layer`.  Every copy is a
    deepcopy of the same BN sharing weight/bias, so all training-mode forwards
    are identical — the dict only reproduces the dispatch semantics."""

    def __init__(self, num_features, bn_layers=("main",)):
        key = jax.random.PRNGKey(0)
        kw, kb = jax.random.split(key)
        # BatchNorm2d default is weight=1, bias=0; perturb slightly so the
        # affine part is actually exercised.
        self.weight = 1.0 + 0.1 * jax.random.normal(kw, (num_features,), jnp.float32)
        self.bias = 0.1 * jax.random.normal(kb, (num_features,), jnp.float32)
        self.BNs = {l: (self.weight, self.bias) for l in bn_layers}
        self.current_layer = "main"
        # TODO(synk): running_mean/running_var momentum updates and eval-mode
        # dispatch are stateful buffers, not part of this forward kernel.

    def __call__(self, x_nchw):
        assert self.current_layer in self.BNs
        w, b = self.BNs[self.current_layer]
        return batchnorm2d_pallas(x_nchw, w, b)


def _bn_reference(x, w, b):
    mean = jnp.mean(x, axis=(0, 2, 3), keepdims=True)
    var = jnp.mean((x - mean) ** 2, axis=(0, 2, 3), keepdims=True)
    y = (x - mean) / jnp.sqrt(var + EPS)
    C = x.shape[1]
    return y * w.reshape(1, C, 1, 1) + b.reshape(1, C, 1, 1)


if __name__ == "__main__":
    # Primary demo shape (fused single-pass path).
    N, C, H, W = 2, 4, 16, 16
    key = jax.random.PRNGKey(0)
    x = jax.random.normal(key, (N, C, H, W), jnp.float32) * 2.0 + 0.5

    mod = MultiBatchNorm2dPallas(num_features=C, bn_layers=("main",))
    out = jax.block_until_ready(mod(x))
    ref = _bn_reference(x, mod.weight, mod.bias)
    assert out.shape == (N, C, H, W)
    assert jnp.allclose(out, ref, atol=1e-4, rtol=1e-4), "fused path mismatch"

    # Also exercise the streamed two-pass path (forced, tiny tile budget so
    # both the partial-sum axis and the spatial accumulation axis have >1 step).
    x2 = jax.random.normal(jax.random.PRNGKey(1), (2, 8, 16, 32), jnp.float32) - 1.5
    w2 = 1.0 + 0.05 * jax.random.normal(jax.random.PRNGKey(2), (8,), jnp.float32)
    b2 = 0.05 * jax.random.normal(jax.random.PRNGKey(3), (8,), jnp.float32)
    out2 = jax.block_until_ready(
        batchnorm2d_pallas(x2, w2, b2, force_two_pass=True,
                           tile_budget_override=8 * 128 * 4))
    ref2 = _bn_reference(x2, w2, b2)
    assert jnp.allclose(out2, ref2, atol=1e-4, rtol=1e-4), "two-pass mismatch"

    print("KERNEL_OK")
</pallas_src>

<mosaic_0001>
module attributes {stable_mosaic.version = 11 : i64} {
  func.func @_fused_kernel(%arg0: memref<2x4x256xf32, #tpu.memory_space<vmem>>, %arg1: memref<4x1xf32, #tpu.memory_space<vmem>>, %arg2: memref<4x1xf32, #tpu.memory_space<vmem>>, %arg3: memref<2x4x256xf32, #tpu.memory_space<vmem>>) attributes {dimension_semantics = [], scalar_prefetch = 0 : i64, scratch_operands = 0 : i64, tpu.core_type = #tpu.core_type<tc>} {
    %c0 = arith.constant 0 : index
    %c0_0 = arith.constant 0 : index
    %c0_1 = arith.constant 0 : index
    %0 = vector.load %arg0[%c0, %c0_0, %c0_1] : memref<2x4x256xf32, #tpu.memory_space<vmem>>, vector<2x4x256xf32>
    %cst = arith.constant dense<0.000000e+00> : vector<2x4xf32>
    %1 = vector.multi_reduction <add>, %0, %cst [2] : vector<2x4x256xf32> to vector<2x4xf32>
    %2 = vector.shape_cast %1 : vector<2x4xf32> to vector<2x4x1xf32>
    %cst_2 = arith.constant dense<0.000000e+00> : vector<4x1xf32>
    %3 = vector.multi_reduction <add>, %2, %cst_2 [0] : vector<2x4x1xf32> to vector<4x1xf32>
    %4 = arith.mulf %0, %0 : vector<2x4x256xf32>
    %cst_3 = arith.constant dense<0.000000e+00> : vector<2x4xf32>
    %5 = vector.multi_reduction <add>, %4, %cst_3 [2] : vector<2x4x256xf32> to vector<2x4xf32>
    %6 = vector.shape_cast %5 : vector<2x4xf32> to vector<2x4x1xf32>
    %cst_4 = arith.constant dense<0.000000e+00> : vector<4x1xf32>
    %7 = vector.multi_reduction <add>, %6, %cst_4 [0] : vector<2x4x1xf32> to vector<4x1xf32>
    %cst_5 = arith.constant 0.001953125 : f32
    %8 = vector.broadcast %cst_5 : f32 to vector<4x1xf32>
    %9 = arith.mulf %3, %8 : vector<4x1xf32>
    %cst_6 = arith.constant 0.001953125 : f32
    %10 = vector.broadcast %cst_6 : f32 to vector<4x1xf32>
    %11 = arith.mulf %7, %10 : vector<4x1xf32>
    %12 = arith.mulf %9, %9 : vector<4x1xf32>
    %13 = arith.subf %11, %12 : vector<4x1xf32>
    %cst_7 = arith.constant 0.000000e+00 : f32
    %14 = vector.broadcast %cst_7 : f32 to vector<4x1xf32>
    %15 = arith.maximumf %13, %14 : vector<4x1xf32>
    %cst_8 = arith.constant 9.99999974E-6 : f32
    %16 = vector.broadcast %cst_8 : f32 to vector<4x1xf32>
    %17 = arith.addf %15, %16 : vector<4x1xf32>
    %18 = math.rsqrt %17 : vector<4x1xf32>
    %c0_9 = arith.constant 0 : index
    %c0_10 = arith.constant 0 : index
    %19 = vector.load %arg1[%c0_9, %c0_10] : memref<4x1xf32, #tpu.memory_space<vmem>>, vector<4x1xf32>
    %20 = arith.mulf %19, %18 : vector<4x1xf32>
    %c0_11 = arith.constant 0 : index
    %c0_12 = arith.constant 0 : index
    %21 = vector.load %arg2[%c0_11, %c0_12] : memref<4x1xf32, #tpu.memory_space<vmem>>, vector<4x1xf32>
    %22 = arith.mulf %9, %20 : vector<4x1xf32>
    %23 = arith.subf %21, %22 : vector<4x1xf32>
    %24 = vector.shape_cast %20 : vector<4x1xf32> to vector<1x4x1xf32>
    %25 = vector.broadcast %24 : vector<1x4x1xf32> to vector<2x4x256xf32>
    %26 = arith.mulf %0, %25 : vector<2x4x256xf32>
    %27 = vector.shape_cast %23 : vector<4x1xf32> to vector<1x4x1xf32>
    %28 = vector.broadcast %27 : vector<1x4x1xf32> to vector<2x4x256xf32>
    %29 = arith.addf %26, %28 : vector<2x4x256xf32>
    %c0_13 = arith.constant 0 : index
    %c0_14 = arith.constant 0 : index
    %c0_15 = arith.constant 0 : index
    %30 = vector.load %arg3[%c0_13, %c0_14, %c0_15] : memref<2x4x256xf32, #tpu.memory_space<vmem>>, vector<2x4x256xf32>
    tpu.vector_store %arg3[%c0_13, %c0_14, %c0_15], %29 {strides = array<i32>} : memref<2x4x256xf32, #tpu.memory_space<vmem>>, vector<2x4x256xf32>,
    return
  }
}

</mosaic_0001>

<bundles_post_ra>
// kernel: tpu_custom_call.1
= control target key start
LH: loop header
LB: loop body
LE: loop exit
PB: predicated region body
PF: predicated region fallthrough
CT: control target
= control target key end

     0   :  { %8 = vsyncpa [#allocation3], 0  ;;  %s282_s0 = inlined_call_operand.hbm [shape: f32[2,4,256], index: 0, kind: input, shape index: {}]   ;;  %s283_s1 = inlined_call_operand.vmem [shape: f32[4,1], index: 1, kind: input, shape index: {}]   ;;  %s284_s2 = inlined_call_operand.vmem [shape: f32[4,1], index: 2, kind: input, shape index: {}]   ;;  %s285_s3 = inlined_call_operand.hbm [shape: f32[2,4,256], index: 3, kind: output, shape index: {}]  }
   0x1   :  { %9 = vsyncpa [#allocation4], 0  ;;  %s14_s14 = sshll.u32 %s282_s0, 4  ;;  %s214_s15 = smov [#allocation2]   ;;  %s15_s14 = int_to_ptr.hbm [resolvable:$true] %s14_s14 }
   0x2   :  { %s16_s16 = sshll.u32 %s214_s15, 4  ;;  %s215_s17 = smov 128   ;;  %s17_s16 = int_to_ptr.vmem [resolvable:$true] %s16_s16 }
   0x3   :  { %s216_s18 = smov 8  }
   0x4   :  { %22 = dma.hbm_to_vmem [thread:$0]  %s15_s14, 256, %s17_s16, [#allocation3], %s215_s17, %s215_s17, %s216_s18  }
   0x5   :  { %210 = dma.done.wait [#allocation3], 256  }
   0x6   :  { %211 = vsyncadd [#allocation3], 4294967040  ;;  %v246_v0 = vld [vmem:[#allocation2] sm:$0xff]  ;;  %v248_v1 = vld [vmem:[#allocation2 + $0x8] sm:$0xff]  ;;  %vm46_vm0 = vcmask 1043456   ;;  %v217_v25 = vmov 0  }
   0x7   :  { %35 = vst [vmem:[#allocation1] ss:$2 sm:$0xff] %v246_v0  ;;  %v60_v2 = vmul.f32 %v246_v0, %v246_v0  ;;  %v61_v3 = vmul.f32 %v248_v1, %v248_v1  ;;  %158 = vset.pattern.permute.xlu2 %v217_v25  ;;  %159 = vset.pattern.permute.xlu0 %v217_v25  ;;  %v104_v47 = vld [vmem:[%s283_s1] sm:$0xf]  ;;  %v218_v53 = vmov 839922192  }
   0x8   :  { %39 = vst [vmem:[#allocation1 + $0x10] ss:$2 sm:$0xff] %v248_v1  ;;  %v106_v51 = vld [vmem:[%s284_s2] sm:$0xf]  ;;  %v114_v54 = vunpack.c.l.s4 %v218_v53  ;;  %s219_s1 = smov [#allocation5]   ;;  %s139_s25 = sshll.u32 %s285_s3, 4  ;;  %s140_s25 = int_to_ptr.hbm [resolvable:$true] %s139_s25 }
   0x9   :  { %s137_s22 = sshll.u32 %s219_s1, 4  ;;  %s138_s22 = int_to_ptr.vmem [resolvable:$true] %s137_s22 }
   0xa   :  { %v115_v56 = vunpack.c.0.s8 %v114_v54 }
   0xe   :  { %v36_v4 = vld.sshfl [vmem:[#allocation1] sm:$0xff pattern:$0x75316420]  ;;  %v37_v5 = vld.sshfl [vmem:[#allocation1 + $0x8] sm:$0xff pattern:$0x75316420] }
   0xf   :  { %v47_v6 = vsel %vm46_vm0, %v36_v4, 0.0  ;;  %v48_v7 = vsel %vm46_vm0, %v37_v5, 0.0  ;;  %64 = vst [vmem:[#allocation1] ss:$2 sm:$0xff] %v60_v2 }
  0x10   :  { %v49_v8 = vadd.f32 %v48_v7, %v47_v6  ;;  %v40_v9 = vld.sshfl [vmem:[#allocation1 + $0x10] sm:$0xff pattern:$0x75316420]  ;;  %v41_v10 = vld.sshfl [vmem:[#allocation1 + $0x18] sm:$0xff pattern:$0x75316420] }
  0x11   :  { %68 = vst [vmem:[#allocation1 + $0x10] ss:$2 sm:$0xff] %v61_v3  ;;  %v52_v11 = vsel %vm46_vm0, %v40_v9, 0.0  ;;  %v53_v12 = vsel %vm46_vm0, %v41_v10, 0.0 }
  0x12   :  { %50 = vadd.xlane.f32.xlu0 %v49_v8  ;;  %v54_v15 = vadd.f32 %v53_v12, %v52_v11 }
  0x16   :  { %v65_v13 = vld.sshfl [vmem:[#allocation1] sm:$0xff pattern:$0x75316420]  ;;  %v66_v14 = vld.sshfl [vmem:[#allocation1 + $0x8] sm:$0xff pattern:$0x75316420] }
  0x17   :  { %v75_v16 = vsel %vm46_vm0, %v65_v13, 0.0  ;;  %v76_v17 = vsel %vm46_vm0, %v66_v14, 0.0 }
  0x18   :  { %v77_v18 = vadd.f32 %v76_v17, %v75_v16  ;;  %v69_v19 = vld.sshfl [vmem:[#allocation1 + $0x10] sm:$0xff pattern:$0x75316420]  ;;  %v70_v20 = vld.sshfl [vmem:[#allocation1 + $0x18] sm:$0xff pattern:$0x75316420] }
  0x19   :  { %v80_v21 = vsel %vm46_vm0, %v69_v19, 0.0  ;;  %v81_v22 = vsel %vm46_vm0, %v70_v20, 0.0 }
  0x1a   :  { %78 = vadd.xlane.f32.xlu1 %v77_v18  ;;  %55 = vadd.xlane.f32.xlu0 %v54_v15  ;;  %v82_v23 = vadd.f32 %v81_v22, %v80_v21 }
  0x22   :  { %83 = vadd.xlane.f32.xlu1 %v82_v23 }
  0x85   :  { %v51_v24 = vpop.xlane.xlu0 %50 }
  0x86   :  { %v57_v29 = vsel %vm46_vm0, %v51_v24, 0.0 }
  0x8d   :  { %v79_v26 = vpop.xlane.xlu1 %78  ;;  %v56_v27 = vpop.xlane.xlu0 %55 }
  0x8e   :  { %v58_v28 = vsel %vm46_vm0, %v56_v27, 0.0  ;;  %v85_v33 = vsel %vm46_vm0, %v79_v26, 0.0 }
  0x8f   :  { %v59_v30 = vadd.f32 %v58_v28, %v57_v29 }
  0x91   :  { %v88_v31 = vmul.f32 0.001953125, %v59_v30 }
  0x93   :  { %v90_v36 = vmul.f32 %v88_v31, %v88_v31 }
  0x95   :  { %v84_v32 = vpop.xlane.xlu1 %83 }
  0x96   :  { %v86_v34 = vsel %vm46_vm0, %v84_v32, 0.0 }
  0x97   :  { %v87_v35 = vadd.f32 %v86_v34, %v85_v33 }
  0x99   :  { %v89_v37 = vmul.f32 0.001953125, %v87_v35 }
  0x9b   :  { %v91_v38 = vsub.f32 %v89_v37, %v90_v36 }
  0x9d   :  { %v92_v39 = vmax.f32 %v91_v38, 0.0 }
  0x9f   :  { %v93_v40 = vadd.f32 1e-05, %v92_v39 }
  0xa1   :  { %160 = vrsqrt.f32 %v93_v40  ;;  %vm100_vm2 = vweird.f32 %v93_v40 }
  0xa7   :  { %v161_v41 = vpop.eup %160 }
  0xa8   :  { %v95_v42 = vmul.f32 %v161_v41, %v93_v40  ;;  %vm101_vm1 = vweird.f32 %v161_v41 }
  0xa9   :  { %vm102_vm3 = vmor %vm100_vm2, %vm101_vm1 }
  0xaa   :  { %v96_v43 = vmul.f32 %v161_v41, %v95_v42 }
  0xac   :  { %v97_v44 = vmul.f32 0.5, %v96_v43 }
  0xae   :  { %v98_v45 = vsub.f32 1.5, %v97_v44 }
  0xb0   :  { %v99_v46 = vmul.f32 %v161_v41, %v98_v45 }
  0xb2   :  { %v103_v48 = vsel %vm102_vm3, %v161_v41, %v99_v46 }
  0xb3   :  { %v105_v49 = vmul.f32 %v104_v47, %v103_v48 }
  0xb5   :  { %111 = vperm.xlu2 %158, %v105_v49   ;;  %v107_v50 = vmul.f32 %v105_v49, %v88_v31 }
  0xb7   :  { %v108_v52 = vsub.f32 %v106_v51, %v107_v50 }
  0xbd   :  { %122 = vperm.xlu2 %158, %v108_v52  }
 0x10f   :  { %v112_v55 = vpop.permute.xlu2 %111 }
 0x110   :  { %v116_v57 = vperm.slane %v112_v55, %v115_v56 }
 0x112   :  { %v118_v59 = vmul.f32 %v116_v57, %v246_v0  ;;  %v119_v60 = vmul.f32 %v116_v57, %v248_v1 }
 0x117   :  { %v123_v58 = vpop.permute.xlu2 %122 }
 0x118   :  { %v127_v61 = vperm.slane %v123_v58, %v115_v56 }
 0x11a   :  { %v129_v62 = vadd.f32 %v127_v61, %v118_v59  ;;  %v130_v63 = vadd.f32 %v127_v61, %v119_v60 }
 0x11c   :  { %131 = vst [vmem:[#allocation5] sm:$0xff] %v129_v62 }
 0x11d   :  { %132 = vst [vmem:[#allocation5 + $0x8] sm:$0xff] %v130_v63 }
 0x11e   :  { %145 = dma.vmem_to_hbm [thread:$0]  %s138_s22, 256, %s140_s25, [#allocation4], %s215_s17, %s215_s17, %s216_s18  }
 0x11f   :  { %212 = dma.done.wait [#allocation4], 256  }
 0x120   :  { %213 = vsyncadd [#allocation4], 4294967040 }
 0x121   :  { %150 = vsyncpa [#allocation3], 1 }
 0x122   :  { %151 = vsyncpa [#allocation4], 1 }

</bundles_post_ra>
